<compile_context>
chip_gen: v7x
topology: tpu7x:2x2x1
jax: 0.10.0
libtpu: 0.0.40
codegen_flags: <defaults>
</compile_context>

<pallas_src>
import jax
import jax.numpy as jnp
from jax import lax
from jax.experimental import pallas as pl
from jax.experimental.pallas import tpu as pltpu


def _gelu(x, approximate=True):
    if approximate:
        # tanh-approximate GELU: the transcendental lowers to the EUP (separate slot).
        c = 0.7978845608028654  # sqrt(2/pi)
        return 0.5 * x * (1.0 + jnp.tanh(c * (x + 0.044715 * (x * x * x))))
    # Exact (erf) GELU, matching torch.nn.GELU() default numerics (VALU-heavy).
    return 0.5 * x * (1.0 + lax.erf(x * 0.7071067811865476))


def _make_cmlp_kernel(act_dtype, approximate):
    def kernel(x_ref, w1_ref, b1_ref, w2_ref, b2_ref, o_ref):
        # x_ref:  (C_in, tile_l)  NCL tile, L on the lane axis
        # w1_ref: (H, C_in)       fc1 weight in compute dtype (e.g. bf16)
        # b1_ref: (H, 1)          act_dtype
        # w2_ref: (C_in, H)       fc2 weight in compute dtype
        # b2_ref: (C_in, 1)       f32
        cdt = w1_ref.dtype
        x = x_ref[...].astype(cdt)
        # fc1: (H, C_in) @ (C_in, tile_l) -> f32 accumulation on the MXU.
        h = jnp.dot(w1_ref[...], x, preferred_element_type=jnp.float32)
        # bias + GELU in act_dtype (bf16 on v6e/v7x: packed VALU + bf16 EUP tanh).
        h = h.astype(act_dtype) + b1_ref[...]
        h = _gelu(h, approximate)
        # fc2: (C_in, H) @ (H, tile_l) -> f32 accumulation (astype is a no-op when
        # act_dtype == compute dtype).
        y = jnp.dot(w2_ref[...], h.astype(cdt), preferred_element_type=jnp.float32)
        y = y + b2_ref[...]
        o_ref[...] = y.astype(o_ref.dtype)
    return kernel


def _device_kind():
    try:
        return jax.devices()[0].device_kind.lower()
    except Exception:
        return ""


def _vmem_capacity_bytes():
    try:
        cap = getattr(pltpu.get_tpu_info(), "vmem_capacity_bytes", None)
        if cap:
            return int(cap)
    except Exception:
        pass
    # Fallback: v7x has 64 MiB/TC, v5e/v6e have 128 MiB.
    return (64 << 20) if "v7" in _device_kind() else (128 << 20)


def cmlp_forward(x_ncl, w1, b1, w2, b2, *, tile_l=None,
                 compute_dtype=jnp.bfloat16, gelu_approximate=True):
    """CMlp forward: y = fc2(GELU(fc1(x))); dropout p=0.0 is the identity.

    x_ncl: (B, C_in, L);  w1: (H, C_in);  b1: (H,);  w2: (C_in, H);  b2: (C_in,)
    Weights may already be in `compute_dtype` (recommended: cast once at init).
    """
    B, C_in, L = x_ncl.shape
    H = w1.shape[0]
    cdt = jnp.dtype(compute_dtype)

    kind = _device_kind()
    capacity = _vmem_capacity_bytes()
    budget = int(0.85 * capacity)

    # v5e has no bf16 VPU/EUP -> keep the activation path in f32 there.
    if cdt == jnp.dtype(jnp.bfloat16) and "v5" not in kind:
        act_dtype = cdt
    else:
        act_dtype = jnp.dtype(jnp.float32)

    if tile_l is None:
        tile_l = 512 if "v7" in kind else 1024

    # Small-L path: fold the batch into the lane axis so stores / MXU N stay lane-dense.
    fold = (L < 128 and B > 1)
    if fold:
        x_run = jnp.transpose(x_ncl, (1, 0, 2)).reshape(1, C_in, B * L)
    else:
        x_run = x_ncl
    Br, _, Lr = x_run.shape

    x_b = jnp.dtype(x_ncl.dtype).itemsize
    w_b = cdt.itemsize

    def vmem_est(t):
        io = 2 * 2 * C_in * t * x_b          # double-buffered x + out tiles
        wts = 2 * 2 * H * C_in * w_b         # resident W1 + W2 (default double-buffered)
        bias = 4 * (H + C_in) * 4
        live = 8 * (H + C_in) * t            # live f32/bf16 hidden + f32 y
        return io + wts + bias + live

    if Lr >= 128:
        # Multiples of 128 (legal lane blocks); shrink until the VMEM estimate fits.
        tile = min(max(128, (int(tile_l) // 128) * 128), (Lr // 128) * 128)
        while tile > 128 and vmem_est(tile) > budget:
            tile -= 128
    else:
        tile = Lr                            # one full-L block (block dim == array dim)

    vmem_limit = int(min(max(int(1.25 * vmem_est(tile)), 32 << 20), budget))

    # Cast only if needed (params stored in compute_dtype avoid a per-call HBM pass).
    w1_c = w1 if w1.dtype == cdt else w1.astype(cdt)
    w2_c = w2 if w2.dtype == cdt else w2.astype(cdt)
    b1_r = b1.reshape(H, 1).astype(act_dtype)
    b2_r = b2.reshape(C_in, 1).astype(jnp.float32)

    grid = (Br, pl.cdiv(Lr, tile))           # ragged tail handled by Pallas (no pad/slice)

    out = pl.pallas_call(
        _make_cmlp_kernel(act_dtype, gelu_approximate),
        out_shape=jax.ShapeDtypeStruct((Br, C_in, Lr), x_ncl.dtype),
        grid_spec=pltpu.PrefetchScalarGridSpec(
            num_scalar_prefetch=0,
            grid=grid,
            in_specs=[
                pl.BlockSpec((None, C_in, tile), lambda b, j: (b, 0, j)),  # x tile
                pl.BlockSpec((H, C_in), lambda b, j: (0, 0)),   # W1 (grid-invariant)
                pl.BlockSpec((H, 1), lambda b, j: (0, 0)),      # b1
                pl.BlockSpec((C_in, H), lambda b, j: (0, 0)),   # W2 (grid-invariant)
                pl.BlockSpec((C_in, 1), lambda b, j: (0, 0)),   # b2
            ],
            out_specs=pl.BlockSpec((None, C_in, tile), lambda b, j: (b, 0, j)),
        ),
        compiler_params=pltpu.CompilerParams(
            dimension_semantics=("parallel", "parallel"),
            vmem_limit_bytes=vmem_limit,
        ),
    )(x_run, w1_c, b1_r, w2_c, b2_r)

    if fold:
        out = jnp.transpose(out.reshape(C_in, B, L), (1, 0, 2))
    return out


def _init_params(key, in_features, hidden_features, dtype=jnp.float32):
    # Deterministic init mimicking PyTorch Conv1d default (uniform +/- 1/sqrt(fan_in)).
    k1, k2, k3, k4 = jax.random.split(key, 4)
    bound1 = 1.0 / (in_features ** 0.5)
    bound2 = 1.0 / (hidden_features ** 0.5)
    w1 = jax.random.uniform(k1, (hidden_features, in_features), dtype, -bound1, bound1)
    b1 = jax.random.uniform(k2, (hidden_features,), dtype, -bound1, bound1)
    w2 = jax.random.uniform(k3, (in_features, hidden_features), dtype, -bound2, bound2)
    b2 = jax.random.uniform(k4, (in_features,), dtype, -bound2, bound2)
    return w1, b1, w2, b2


if __name__ == "__main__":
    B, C_in, L = 2, 4, 16          # batch, in_features (channels), sequence length
    H = 32                         # hidden_features

    key = jax.random.PRNGKey(0)
    kx, kp = jax.random.split(key)
    x = jax.random.normal(kx, (B, C_in, L), dtype=jnp.float32)
    w1, b1, w2, b2 = _init_params(kp, C_in, H)

    # Store matmul params in the compute dtype once (no per-call weight cast pass).
    w1_c = w1.astype(jnp.bfloat16)
    w2_c = w2.astype(jnp.bfloat16)

    fwd = jax.jit(cmlp_forward)
    out = jax.block_until_ready(fwd(x, w1_c, b1, w2_c, b2))

    # Reference (f32, tanh-approx GELU) with the same bf16-rounded matmul operands;
    # 1x1 Conv1d == channel matmul.
    rd = lambda a: a.astype(jnp.bfloat16).astype(jnp.float32)
    h_ref = _gelu(jnp.einsum("hc,bcl->bhl", rd(w1), rd(x)) + b1[None, :, None], True)
    y_ref = jnp.einsum("ch,bhl->bcl", rd(w2), rd(h_ref)) + b2[None, :, None]

    assert out.shape == (B, C_in, L)
    assert out.dtype == x.dtype
    max_err = float(jnp.max(jnp.abs(out - y_ref)))
    assert jnp.allclose(out, y_ref, atol=3e-2, rtol=3e-2), max_err
    print("KERNEL_OK")
</pallas_src>

<mosaic_0001>
module attributes {stable_mosaic.version = 11 : i64} {
  func.func @kernel(%arg0: i32, %arg1: i32, %arg2: memref<1x4x32xf32, #tpu.memory_space<vmem>>, %arg3: memref<32x4xbf16, #tpu.memory_space<vmem>>, %arg4: memref<32x1xbf16, #tpu.memory_space<vmem>>, %arg5: memref<4x32xbf16, #tpu.memory_space<vmem>>, %arg6: memref<4x1xf32, #tpu.memory_space<vmem>>, %arg7: memref<1x4x32xf32, #tpu.memory_space<vmem>>) attributes {dimension_semantics = [#tpu.dimension_semantics<parallel>, #tpu.dimension_semantics<parallel>], iteration_bounds = array<i64: 1, 1>, scalar_prefetch = 0 : i64, scratch_operands = 0 : i64, tpu.core_type = #tpu.core_type<tc>, window_params = [{transform_indices = @transform_0, window_bounds = array<i64: 1, 4, 32>}, {pipeline_mode = #tpu.pipeline_mode<synchronous>, transform_indices = @transform_1, window_bounds = array<i64: 32, 4>}, {pipeline_mode = #tpu.pipeline_mode<synchronous>, transform_indices = @transform_2, window_bounds = array<i64: 32, 1>}, {pipeline_mode = #tpu.pipeline_mode<synchronous>, transform_indices = @transform_3, window_bounds = array<i64: 4, 32>}, {pipeline_mode = #tpu.pipeline_mode<synchronous>, transform_indices = @transform_4, window_bounds = array<i64: 4, 1>}, {transform_indices = @transform_5, window_bounds = array<i64: 1, 4, 32>}]} {
    %c0 = arith.constant 0 : index
    %c0_0 = arith.constant 0 : index
    %c0_1 = arith.constant 0 : index
    %0 = vector.load %arg2[%c0, %c0_0, %c0_1] : memref<1x4x32xf32, #tpu.memory_space<vmem>>, vector<1x4x32xf32>
    %1 = vector.shape_cast %0 : vector<1x4x32xf32> to vector<4x32xf32>
    %2 = arith.truncf %1 : vector<4x32xf32> to vector<4x32xbf16>
    %c0_2 = arith.constant 0 : index
    %c0_3 = arith.constant 0 : index
    %3 = vector.load %arg3[%c0_2, %c0_3] : memref<32x4xbf16, #tpu.memory_space<vmem>>, vector<32x4xbf16>
    %cst = arith.constant dense<0.000000e+00> : vector<32x32xf32>
    %4 = tpu.matmul %3, %2, %cst {dimension_numbers = #tpu.dot_dimension_numbers<[1], [0], [0], [1], [0, 0, 1, 1], [], []>} : vector<32x4xbf16>, vector<4x32xbf16>, vector<32x32xf32> -> vector<32x32xf32>
    %5 = arith.truncf %4 : vector<32x32xf32> to vector<32x32xbf16>
    %c0_4 = arith.constant 0 : index
    %c0_5 = arith.constant 0 : index
    %6 = vector.load %arg4[%c0_4, %c0_5] : memref<32x1xbf16, #tpu.memory_space<vmem>>, vector<32x1xbf16>
    %7 = vector.broadcast %6 : vector<32x1xbf16> to vector<32x32xbf16>
    %8 = arith.addf %5, %7 : vector<32x32xbf16>
    %cst_6 = arith.constant 5.000000e-01 : bf16
    %9 = vector.broadcast %cst_6 : bf16 to vector<32x32xbf16>
    %10 = arith.mulf %9, %8 : vector<32x32xbf16>
    %11 = arith.mulf %8, %8 : vector<32x32xbf16>
    %12 = arith.mulf %11, %8 : vector<32x32xbf16>
    %cst_7 = arith.constant 4.467770e-02 : bf16
    %13 = vector.broadcast %cst_7 : bf16 to vector<32x32xbf16>
    %14 = arith.mulf %13, %12 : vector<32x32xbf16>
    %15 = arith.addf %8, %14 : vector<32x32xbf16>
    %cst_8 = arith.constant 7.968750e-01 : bf16
    %16 = vector.broadcast %cst_8 : bf16 to vector<32x32xbf16>
    %17 = arith.mulf %16, %15 : vector<32x32xbf16>
    %18 = math.tanh %17 : vector<32x32xbf16>
    %cst_9 = arith.constant 1.000000e+00 : bf16
    %19 = vector.broadcast %cst_9 : bf16 to vector<32x32xbf16>
    %20 = arith.addf %19, %18 : vector<32x32xbf16>
    %21 = arith.mulf %10, %20 : vector<32x32xbf16>
    %c0_10 = arith.constant 0 : index
    %c0_11 = arith.constant 0 : index
    %22 = vector.load %arg5[%c0_10, %c0_11] : memref<4x32xbf16, #tpu.memory_space<vmem>>, vector<4x32xbf16>
    %cst_12 = arith.constant dense<0.000000e+00> : vector<4x32xf32>
    %23 = tpu.matmul %22, %21, %cst_12 {dimension_numbers = #tpu.dot_dimension_numbers<[1], [0], [0], [1], [0, 0, 1, 1], [], []>} : vector<4x32xbf16>, vector<32x32xbf16>, vector<4x32xf32> -> vector<4x32xf32>
    %c0_13 = arith.constant 0 : index
    %c0_14 = arith.constant 0 : index
    %24 = vector.load %arg6[%c0_13, %c0_14] : memref<4x1xf32, #tpu.memory_space<vmem>>, vector<4x1xf32>
    %25 = vector.broadcast %24 : vector<4x1xf32> to vector<4x32xf32>
    %26 = arith.addf %23, %25 : vector<4x32xf32>
    %c0_15 = arith.constant 0 : index
    %c0_16 = arith.constant 0 : index
    %c0_17 = arith.constant 0 : index
    %27 = vector.load %arg7[%c0_15, %c0_16, %c0_17] : memref<1x4x32xf32, #tpu.memory_space<vmem>>, vector<1x4x32xf32>
    %28 = vector.shape_cast %27 : vector<1x4x32xf32> to vector<4x32xf32>
    %29 = vector.shape_cast %26 : vector<4x32xf32> to vector<1x4x32xf32>
    tpu.vector_store %arg7[%c0_15, %c0_16, %c0_17], %29 {strides = array<i32>} : memref<1x4x32xf32, #tpu.memory_space<vmem>>, vector<1x4x32xf32>,
    return
  }
  func.func @transform_0(%arg0: i32, %arg1: i32) -> (i32, i32, i32) {
    %c0_i32 = arith.constant 0 : i32
    %c0_i32_0 = arith.constant 0 : i32
    return %arg0, %c0_i32, %arg1 : i32, i32, i32
  }
  func.func @transform_1(%arg0: i32, %arg1: i32) -> (i32, i32) {
    %c0_i32 = arith.constant 0 : i32
    %c0_i32_0 = arith.constant 0 : i32
    %c0_i32_1 = arith.constant 0 : i32
    return %c0_i32, %c0_i32_0 : i32, i32
  }
  func.func @transform_2(%arg0: i32, %arg1: i32) -> (i32, i32) {
    %c0_i32 = arith.constant 0 : i32
    %c0_i32_0 = arith.constant 0 : i32
    %c0_i32_1 = arith.constant 0 : i32
    return %c0_i32, %c0_i32_0 : i32, i32
  }
  func.func @transform_3(%arg0: i32, %arg1: i32) -> (i32, i32) {
    %c0_i32 = arith.constant 0 : i32
    %c0_i32_0 = arith.constant 0 : i32
    %c0_i32_1 = arith.constant 0 : i32
    return %c0_i32, %c0_i32_0 : i32, i32
  }
  func.func @transform_4(%arg0: i32, %arg1: i32) -> (i32, i32) {
    %c0_i32 = arith.constant 0 : i32
    %c0_i32_0 = arith.constant 0 : i32
    %c0_i32_1 = arith.constant 0 : i32
    return %c0_i32, %c0_i32_0 : i32, i32
  }
  func.func @transform_5(%arg0: i32, %arg1: i32) -> (i32, i32, i32) {
    %c0_i32 = arith.constant 0 : i32
    %c0_i32_0 = arith.constant 0 : i32
    return %arg0, %c0_i32, %arg1 : i32, i32, i32
  }
}

</mosaic_0001>

<bundles_post_ra>
// kernel: cmlp_forward.1
= control target key start
LH: loop header
LB: loop body
LE: loop exit
PB: predicated region body
PF: predicated region fallthrough
CT: control target
= control target key end

     0   :  { %vm48_vm0 = vcmask 1041408   ;;  %vm41_vm1 = vcmask 31744   ;;  %v284_v1 = vmov 0   ;;  %v285_v11 = vmov 0.0   ;;  %s350_s0 = inlined_call_operand.vmem [shape: f32[1,4,32], index: 0, kind: input, shape index: {}]   ;;  %s351_s1 = inlined_call_operand.vmem [shape: bf16[32,4], index: 1, kind: input, shape index: {}]   ;;  %s352_s2 = inlined_call_operand.vmem [shape: bf16[32,1], index: 2, kind: input, shape index: {}]   ;;  %s353_s4 = inlined_call_operand.vmem [shape: f32[4,1], index: 4, kind: input, shape index: {}]   ;;  %s354_s3 = inlined_call_operand.vmem [shape: bf16[4,32], index: 3, kind: input, shape index: {}]   ;;  %s355_s5 = inlined_call_operand.vmem [shape: f32[1,4,32], index: 5, kind: output, shape index: {}]  }
   0x1   :  { %v25_v0 = vld [vmem:[%s350_s0] sm:$0xf]  ;;  %276 = vset.pattern.permute.xlu0 %v284_v1  ;;  %277 = vset.pattern.permute.xlu1 %v284_v1  ;;  %v279_v6 = vld [vmem:[%s351_s1 + $0x8] sm:$0xff]   ;;  %v104_v8 = vld [vmem:[%s352_s2 + $0x4] sm:$0xf]  ;;  %vm286_vm2 = vmmov 0   ;;  %v115_v14 = vlaneseq }
   0x2   :  { %v26_v2 = vpack.c.bf16 %v25_v0, %v25_v0  ;;  %v278_v3 = vld [vmem:[%s351_s1] sm:$0xff]   ;;  %v105_v7 = vld [vmem:[%s352_s2 + $0x8] sm:$0xf]  ;;  %v106_v9 = vld [vmem:[%s352_s2 + $0xc] sm:$0xf]  ;;  %263 = vmatprep.subr.bf16.mxu1 %v285_v11  ;;  %267 = vmatprep.mubr.msk.bf16.mxu1 %vm286_vm2, %v285_v11  ;;  %vm194_vm3 = vcmask 261120  }
   0x3   :  { %v103_v4 = vld [vmem:[%s352_s2] sm:$0xf]  ;;  %259 = vmatprep.mubr.msk.bf16.mxu0 %vm41_vm1, %v278_v3  ;;  %133 = vperm.xlu1 %277, %v105_v7   ;;  %v287_v12 = vmov 839922192   ;;  %v116_v17 = vshrl.u32 %v115_v14, 7  ;;  %vm238_vm4 = vcmask 257024  }
   0x4   :  { %271 = vmatprep.subr.msk.bf16.mxu0 %vm48_vm0, %v26_v2  ;;  %v50_v5 = vsel %vm48_vm0, %v26_v2, 0  ;;  %109 = vperm.xlu0 %276, %v103_v4   ;;  %v188_v10 = vld [vmem:[%s353_s4] sm:$0xf]  ;;  %v113_v13 = vunpack.c.l.s4 %v287_v12 }
   0x5   :  { %258 = vmatpush3.bf16.msra.mxu0 %v50_v5  ;;  %v187_v54 = vld [vmem:[%s354_s3] sm:$0x3] }
   0x6   :  { %v114_v16 = vunpack.c.0.s8 %v113_v13 }
   0x7   :  { %145 = vperm.xlu1 %277, %v106_v9  }
   0x8   :  { %260 = vmatmul.mubr.msk.bf16.vlgmr.msra.gmra.mrb[0].mxu0 %vm41_vm1, %v279_v6  ;;  %121 = vperm.xlu0 %276, %v104_v8   ;;  %v117_v20 = vsub.s32 %v114_v16, %v116_v17 }
   0xc   :  { %191 = vperm.xlu0 %276, %v188_v10  }
  0x82   :  { %v134_v15 = vpop.permute.xlu1 %133 }
  0x83   :  { %v110_v18 = vpop.permute.xlu0 %109  ;;  %v142_v21 = vrot.slane %v134_v15, %v117_v20 }
  0x84   :  { %v118_v24 = vrot.slane %v110_v18, %v117_v20 }
  0x86   :  { %v146_v19 = vpop.permute.xlu1 %145 }
  0x87   :  { %v154_v22 = vrot.slane %v146_v19, %v117_v20  ;;  %v122_v23 = vpop.permute.xlu0 %121 }
  0x88   :  { %v130_v25 = vrot.slane %v122_v23, %v117_v20 }
  0x89   :  { %v249_v27 = vcombine.low %v142_v21, %v154_v22 }
  0x8a   :  { %v248_v32 = vcombine.low %v118_v24, %v130_v25 }
  0x8b   :  { %v192_v55 = vpop.permute.xlu0 %191 }
  0xdb   :  { %v261_v26 = vpop.f32.mrb[0].mxu0 }
  0xdc   :  { %v86_v28 = vpop.f32.mrb[1].mxu0 }
  0xdd   :  { %v262_v29 = vpop.f32.mrb[2].mxu0 }
  0xde   :  { %v102_v30 = vpack.c.bf16 %v262_v29, %v261_v26  ;;  %v89_v31 = vpop.f32.mrb[3].mxu0 }
  0xdf   :  { %v101_v33 = vpack.c.bf16 %v89_v31, %v86_v28 }
  0xe0   :  { %v168_v34 = vadd.bf16 %v249_v27, %v102_v30 }
  0xe1   :  { %v167_v35 = vadd.bf16 %v248_v32, %v101_v33 }
  0xe2   :  { %v172_v36 = vmul.bf16 %v168_v34, %v168_v34  ;;  %v170_v52 = vmul.bf16 1056980736, %v168_v34 }
  0xe3   :  { %v171_v37 = vmul.bf16 %v167_v35, %v167_v35  ;;  %v169_v48 = vmul.bf16 1056980736, %v167_v35 }
  0xe4   :  { %v174_v38 = vmul.bf16 %v172_v36, %v168_v34 }
  0xe5   :  { %v173_v39 = vmul.bf16 %v171_v37, %v167_v35 }
  0xe6   :  { %v176_v40 = vmul.bf16 1027030327, %v174_v38 }
  0xe7   :  { %v175_v41 = vmul.bf16 1027030327, %v173_v39 }
  0xe8   :  { %v178_v42 = vadd.bf16 %v176_v40, %v168_v34 }
  0xe9   :  { %v177_v43 = vadd.bf16 %v175_v41, %v167_v35 }
  0xea   :  { %v180_v44 = vmul.bf16 1061961548, %v178_v42 }
  0xeb   :  { %v179_v45 = vmul.bf16 1061961548, %v177_v43 }
  0xec   :  { %280 = vtanh.bf16 %v180_v44 }
  0xed   :  { %282 = vtanh.bf16 %v179_v45 }
  0xf7   :  { %v281_v46 = vpop.eup %280 }
  0xf8   :  { %v283_v47 = vpop.eup %282  ;;  %v184_v51 = vadd.bf16 1065369472, %v281_v46 }
  0xf9   :  { %v183_v49 = vadd.bf16 1065369472, %v283_v47 }
  0xfa   :  { %v186_v53 = vmul.bf16 %v184_v51, %v170_v52 }
  0xfb   :  { %v185_v50 = vmul.bf16 %v183_v49, %v169_v48 }
  0xfd   :  { %264 = vmatpush3.bf16.msra.mxu1 %v185_v50 }
  0xfe   :  { %265 = vmatprep.subr.bf16.mxu1 %v285_v11 }
 0x101   :  { %266 = vmatpush3.bf16.msra.mxu1 %v186_v53 }
 0x104   :  { %268 = vmatmul.mubr.msk.bf16.vlgmr.msra.gmra.mrb[0].mxu1 %vm194_vm3, %v187_v54 }
 0x1d7   :  { %v232_v56 = vpop.f32.mrb[0].mxu1 }
 0x1d8   :  { %v233_v57 = vadd.f32 %v232_v56, %v192_v55  ;;  %v269_v58 = vpop.f32.mrb[1].mxu1 }
 0x1d9   :  { %v235_v59 = vpop.f32.mrb[2].mxu1 }
 0x1da   :  { %239 = vst.msk [vmem:[%s355_s5] sm:$0xf] %vm238_vm4, %v233_v57  ;;  %v270_v60 = vpop.f32.mrb[3].mxu1 }

</bundles_post_ra>
